<compile_context>
chip_gen: v7x
topology: tpu7x:2x2x1
jax: 0.10.0
libtpu: 0.0.40
codegen_flags: <defaults>
</compile_context>

<pallas_src>
import functools

import jax
import jax.numpy as jnp
from jax.experimental import pallas as pl
from jax.experimental.pallas import tpu as pltpu


def _qkv_matmul_kernel(x_ref, w_ref, b_ref, o_ref, acc_ref):
    """One (TM, TN) output tile, accumulated over the K grid axis.

    x_ref: (TM, TK)   activations tile
    w_ref: (TK, TN)   weight tile (already transposed to (C, 3*H*Dh) layout)
    b_ref: (1,  TN)   bias tile
    o_ref: (TM, TN)   output tile
    acc_ref: (TM, TN) f32 VMEM accumulator (persists across the K axis)
    """
    k = pl.program_id(2)

    @pl.when(k == 0)
    def _():
        acc_ref[...] = jnp.zeros_like(acc_ref)

    acc_ref[...] += jnp.dot(
        x_ref[...], w_ref[...], preferred_element_type=jnp.float32
    )

    @pl.when(k == pl.num_programs(2) - 1)
    def _():
        o_ref[...] = (
            acc_ref[...] + b_ref[...].astype(jnp.float32)
        ).astype(o_ref.dtype)


def _pick_tile(dim: int, candidates) -> int:
    """Largest candidate that evenly divides `dim`; else the full extent."""
    for c in candidates:
        if c <= dim and dim % c == 0:
            return c
    return dim  # full-extent block is always legal


@functools.partial(jax.jit, static_argnames=("num_heads", "head_dim"))
def qkv_layer(x: jax.Array, weight: jax.Array, bias: jax.Array,
              *, num_heads: int, head_dim: int) -> jax.Array:
    """Pallas equivalent of QKVLayer.forward.

    x:      (B, N, C)
    weight: (3*num_heads*head_dim, C)   -- PyTorch nn.Linear layout
    bias:   (3*num_heads*head_dim,)
    returns (3, B, num_heads, N, head_dim)
    """
    B, N, C = x.shape
    NO = weight.shape[0]
    assert NO == 3 * num_heads * head_dim, "weight out-features mismatch"
    assert weight.shape[1] == C and bias.shape == (NO,)

    M = B * N
    x2 = x.reshape(M, C)
    wt = jnp.transpose(weight)      # (C, NO): contraction dim leading
    b2 = bias.reshape(1, NO)

    # VMEM-safe tiles, multiples of (8, 128) when the dims allow it.
    TM = _pick_tile(M, (512, 256, 128, 64, 32, 16, 8))
    TN = _pick_tile(NO, (512, 384, 256, 128))
    TK = _pick_tile(C, (512, 256, 128))

    grid = (M // TM, NO // TN, C // TK)

    out2 = pl.pallas_call(
        _qkv_matmul_kernel,
        out_shape=jax.ShapeDtypeStruct((M, NO), x.dtype),
        grid_spec=pltpu.PrefetchScalarGridSpec(
            num_scalar_prefetch=0,
            grid=grid,
            in_specs=[
                pl.BlockSpec((TM, TK), lambda i, j, k: (i, k)),   # x
                pl.BlockSpec((TK, TN), lambda i, j, k: (k, j)),   # w^T
                pl.BlockSpec((1, TN), lambda i, j, k: (0, j)),    # bias
            ],
            out_specs=pl.BlockSpec((TM, TN), lambda i, j, k: (i, j)),
            scratch_shapes=[pltpu.VMEM((TM, TN), jnp.float32)],
        ),
        compiler_params=pltpu.CompilerParams(
            dimension_semantics=("parallel", "parallel", "arbitrary"),
        ),
    )(x2, wt, b2)

    # Pure layout: (B*N, 3*H*Dh) -> (B, N, 3, H, Dh) -> (3, B, H, N, Dh).
    qkv = out2.reshape(B, N, 3, num_heads, head_dim)
    return jnp.transpose(qkv, (2, 0, 3, 1, 4))


if __name__ == "__main__":
    # Small ViT-like shapes: batch=2, seq=8, hidden C=32, heads=4, head_dim=8.
    B, N, C = 2, 8, 32
    num_heads, head_dim = 4, 8
    NO = 3 * num_heads * head_dim

    key = jax.random.PRNGKey(0)
    kx, kw, kb = jax.random.split(key, 3)
    x = jax.random.normal(kx, (B, N, C), dtype=jnp.float32)
    weight = jax.random.normal(kw, (NO, C), dtype=jnp.float32) * 0.05
    bias = jax.random.normal(kb, (NO,), dtype=jnp.float32) * 0.05

    out = qkv_layer(x, weight, bias, num_heads=num_heads, head_dim=head_dim)
    out = jax.block_until_ready(out)

    # Reference: plain JAX replica of the PyTorch forward.
    ref = (x @ weight.T + bias).reshape(B, N, 3, num_heads, head_dim)
    ref = jnp.transpose(ref, (2, 0, 3, 1, 4))

    assert out.shape == (3, B, num_heads, N, head_dim)
    assert jnp.allclose(out, ref, atol=1e-5, rtol=1e-5)

    print("KERNEL_OK")
</pallas_src>

<mosaic_0001>
module attributes {stable_mosaic.version = 11 : i64} {
  func.func @_qkv_matmul_kernel(%arg0: i32, %arg1: i32, %arg2: i32, %arg3: memref<16x32xf32, #tpu.memory_space<vmem>>, %arg4: memref<32x96xf32, #tpu.memory_space<vmem>>, %arg5: memref<1x96xf32, #tpu.memory_space<vmem>>, %arg6: memref<16x96xf32, #tpu.memory_space<vmem>>, %arg7: memref<16x96xf32, #tpu.memory_space<vmem>>) attributes {dimension_semantics = [#tpu.dimension_semantics<parallel>, #tpu.dimension_semantics<parallel>, #tpu.dimension_semantics<arbitrary>], iteration_bounds = array<i64: 1, 1, 1>, scalar_prefetch = 0 : i64, scratch_operands = 1 : i64, tpu.core_type = #tpu.core_type<tc>, window_params = [{transform_indices = @transform_0, window_bounds = array<i64: 16, 32>}, {transform_indices = @transform_1, window_bounds = array<i64: 32, 96>}, {transform_indices = @transform_2, window_bounds = array<i64: 1, 96>}, {transform_indices = @transform_3, window_bounds = array<i64: 16, 96>}]} {
    %c0_i32 = arith.constant 0 : i32
    %0 = arith.cmpi eq, %arg2, %c0_i32 : i32
    %1 = arith.extui %0 : i1 to i32
    %c0_i32_0 = arith.constant 0 : i32
    %2 = arith.cmpi ne, %1, %c0_i32_0 : i32
    scf.if %2 {
      %cst_10 = arith.constant 0.000000e+00 : f32
      %12 = vector.broadcast %cst_10 : f32 to vector<16x96xf32>
      %c0_11 = arith.constant 0 : index
      %c0_12 = arith.constant 0 : index
      %13 = vector.load %arg7[%c0_11, %c0_12] : memref<16x96xf32, #tpu.memory_space<vmem>>, vector<16x96xf32>
      tpu.vector_store %arg7[%c0_11, %c0_12], %12 {strides = array<i32>} : memref<16x96xf32, #tpu.memory_space<vmem>>, vector<16x96xf32>,
    } else {
    }
    %c0 = arith.constant 0 : index
    %c0_1 = arith.constant 0 : index
    %3 = vector.load %arg7[%c0, %c0_1] : memref<16x96xf32, #tpu.memory_space<vmem>>, vector<16x96xf32>
    %c0_2 = arith.constant 0 : index
    %c0_3 = arith.constant 0 : index
    %4 = vector.load %arg3[%c0_2, %c0_3] : memref<16x32xf32, #tpu.memory_space<vmem>>, vector<16x32xf32>
    %c0_4 = arith.constant 0 : index
    %c0_5 = arith.constant 0 : index
    %5 = vector.load %arg4[%c0_4, %c0_5] : memref<32x96xf32, #tpu.memory_space<vmem>>, vector<32x96xf32>
    %cst = arith.constant dense<0.000000e+00> : vector<16x96xf32>
    %6 = tpu.matmul %4, %5, %cst {dimension_numbers = #tpu.dot_dimension_numbers<[1], [0], [0], [1], [0, 0, 1, 1], [], []>} : vector<16x32xf32>, vector<32x96xf32>, vector<16x96xf32> -> vector<16x96xf32>
    %7 = arith.addf %3, %6 : vector<16x96xf32>
    %c0_6 = arith.constant 0 : index
    %c0_7 = arith.constant 0 : index
    %8 = vector.load %arg7[%c0_6, %c0_7] : memref<16x96xf32, #tpu.memory_space<vmem>>, vector<16x96xf32>
    tpu.vector_store %arg7[%c0_6, %c0_7], %7 {strides = array<i32>} : memref<16x96xf32, #tpu.memory_space<vmem>>, vector<16x96xf32>,
    %c0_i32_8 = arith.constant 0 : i32
    %9 = arith.cmpi eq, %arg2, %c0_i32_8 : i32
    %10 = arith.extui %9 : i1 to i32
    %c0_i32_9 = arith.constant 0 : i32
    %11 = arith.cmpi ne, %10, %c0_i32_9 : i32
    scf.if %11 {
      %c0_10 = arith.constant 0 : index
      %c0_11 = arith.constant 0 : index
      %12 = vector.load %arg7[%c0_10, %c0_11] : memref<16x96xf32, #tpu.memory_space<vmem>>, vector<16x96xf32>
      %c0_12 = arith.constant 0 : index
      %c0_13 = arith.constant 0 : index
      %13 = vector.load %arg5[%c0_12, %c0_13] : memref<1x96xf32, #tpu.memory_space<vmem>>, vector<1x96xf32>
      %14 = vector.broadcast %13 : vector<1x96xf32> to vector<16x96xf32>
      %15 = arith.addf %12, %14 : vector<16x96xf32>
      %c0_14 = arith.constant 0 : index
      %c0_15 = arith.constant 0 : index
      %16 = vector.load %arg6[%c0_14, %c0_15] : memref<16x96xf32, #tpu.memory_space<vmem>>, vector<16x96xf32>
      tpu.vector_store %arg6[%c0_14, %c0_15], %15 {strides = array<i32>} : memref<16x96xf32, #tpu.memory_space<vmem>>, vector<16x96xf32>,
    } else {
    }
    return
  }
  func.func @transform_0(%arg0: i32, %arg1: i32, %arg2: i32) -> (i32, i32) {
    %c0_i32 = arith.constant 0 : i32
    return %arg0, %arg2 : i32, i32
  }
  func.func @transform_1(%arg0: i32, %arg1: i32, %arg2: i32) -> (i32, i32) {
    %c0_i32 = arith.constant 0 : i32
    return %arg2, %arg1 : i32, i32
  }
  func.func @transform_2(%arg0: i32, %arg1: i32, %arg2: i32) -> (i32, i32) {
    %c0_i32 = arith.constant 0 : i32
    %c0_i32_0 = arith.constant 0 : i32
    return %c0_i32, %arg1 : i32, i32
  }
  func.func @transform_3(%arg0: i32, %arg1: i32, %arg2: i32) -> (i32, i32) {
    %c0_i32 = arith.constant 0 : i32
    return %arg0, %arg1 : i32, i32
  }
}

</mosaic_0001>

<bundles_post_ra>
// kernel: qkv_layer.1
= control target key start
LH: loop header
LB: loop body
LE: loop exit
PB: predicated region body
PF: predicated region fallthrough
CT: control target
= control target key end

     0   :  { %8 = vsyncpa [#allocation4], 0  ;;  %s311_s0 = inlined_call_operand.hbm [shape: f32[16,32], index: 0, kind: input, shape index: {}]   ;;  %s312_s1 = inlined_call_operand.hbm [shape: f32[32,96], index: 1, kind: input, shape index: {}]   ;;  %s313_s2 = inlined_call_operand.vmem [shape: f32[1,96], index: 2, kind: input, shape index: {}]   ;;  %s314_s3 = inlined_call_operand.vmem [shape: f32[16,96], index: 3, kind: output, shape index: {}]  }
   0x1   :  { %9 = vsyncpa [#allocation6], 0  ;;  %s247_s12 = smov [#allocation3]   ;;  %s199_s16 = scalar_lea.hbm %s311_s0, 256 }
   0x2   :  { %s15_s13 = sshll.u32 %s247_s12, 4  ;;  %p200_p0 = scmp.ne.s32.totalorder %s311_s0, %s199_s16  ;;  %s16_s13 = int_to_ptr.vmem [resolvable:$true] %s15_s13 }
   0x3   :  { %p203_p1 = scmp.lt.u32.totalorder %s199_s16, %s311_s0 }
   0x5   :  { %p205_p2 = pnand %p203_p1, %p200_p0 }
   0x7   :  { %208 = shalt.err (!%p205_p2)
}
   0x8   :  { %s209_s21 = scalar_lea.vmem %s16_s13, 256  ;;  %p214_p4 = scmp.lt.s32.totalorder %s16_s13, %s16_s13 }
   0x9   :  { %p210_p3 = scmp.ne.s32.totalorder %s16_s13, %s209_s21  ;;  %p215_p5 = scmp.lt.s32.totalorder %s209_s21, %s209_s21 }
   0xb   :  { %p216_p6 = por %p215_p5, %p214_p4 }
   0xd   :  { %p217_p7 = pnand %p216_p6, %p210_p3 }
   0xf   :  { %220 = shalt.err (!%p217_p7)
}
  0x10   :  { %s248_s22 = smov 128   ;;  %s249_s23 = smov 8  }
  0x11   :  { %21 = dma.hbm_to_vmem [thread:$0]  %s311_s0, 256, %s16_s13, [#allocation4], %s248_s22, %s248_s22, %s249_s23  }
  0x12   :  { %s250_s26 = smov [#allocation5]   ;;  %s221_s30 = scalar_lea.hbm %s312_s1, 512 }
  0x13   :  { %s27_s27 = sshll.u32 %s250_s26, 4  ;;  %p222_p8 = scmp.ne.s32.totalorder %s312_s1, %s221_s30  ;;  %s28_s27 = int_to_ptr.vmem [resolvable:$true] %s27_s27 }
  0x14   :  { %p225_p9 = scmp.lt.u32.totalorder %s221_s30, %s312_s1 }
  0x16   :  { %p227_p10 = pnand %p225_p9, %p222_p8 }
  0x18   :  { %230 = shalt.err (!%p227_p10)
}
  0x19   :  { %s231_s8 = scalar_lea.vmem %s28_s27, 512  ;;  %p236_p12 = scmp.lt.s32.totalorder %s28_s27, %s28_s27 }
  0x1a   :  { %p232_p11 = scmp.ne.s32.totalorder %s28_s27, %s231_s8  ;;  %p237_p13 = scmp.lt.s32.totalorder %s231_s8, %s231_s8 }
  0x1c   :  { %p238_p0 = por %p237_p13, %p236_p12 }
  0x1e   :  { %p239_p1 = pnand %p238_p0, %p232_p11 }
  0x20   :  { %242 = shalt.err (!%p239_p1)
}
  0x21   :  { %33 = dma.hbm_to_vmem [thread:$0]  %s312_s1, 512, %s28_s27, [#allocation6], %s248_s22, %s248_s22, %s249_s23  }
  0x22   :  { %243 = dma.done.wait [#allocation4], 256  }
  0x23   :  { %244 = vsyncadd [#allocation4], 4294967040 }
  0x24   :  { %245 = dma.done.wait [#allocation6], 512  }
  0x25   :  { %246 = vsyncadd [#allocation6], 4294966784  ;;  %vm46_vm0 = vcmask 785408   ;;  %v251_v0 = vmov 0.0   ;;  %vm57_vm1 = vcmask 261120   ;;  %v53_v1 = vld [vmem:[#allocation5] sm:$0xff] }
  0x26   :  { %48 = vst.msk [vmem:[#allocation2 + $0x8] sm:$0xff] %vm46_vm0, %v251_v0  ;;  %47 = vst.msk [vmem:[#allocation2] sm:$0xff] %vm46_vm0, %v251_v0  ;;  %v54_v2 = vld [vmem:[#allocation5 + $0x8] sm:$0xff]  ;;  %v55_v3 = vld [vmem:[#allocation5 + $0x10] sm:$0xff] }
  0x27   :  { %v186_v4 = vpack.c.bf16 %v54_v2, %v53_v1  ;;  %v56_v5 = vld [vmem:[#allocation5 + $0x18] sm:$0xff]  ;;  %v51_v6 = vld [vmem:[#allocation3] sm:$0xff]  ;;  %v168_v15 = vld [vmem:[%s313_s2] ss:$0 sm:$0xff] }
  0x28   :  { %v190_v7 = vpack.c.bf16 %v56_v5, %v55_v3  ;;  %183 = vmatprep.mubr.msk.f32.mxu0 %vm57_vm1, %v51_v6  ;;  %v52_v8 = vld [vmem:[#allocation3 + $0x8] sm:$0xff] }
  0x29   :  { %187 = vmatprep.subr.bf16.mxu0 %v186_v4 }
  0x2a   :  { %189 = vmatpush3.bf16.msra.mxu0 %v186_v4 }
  0x2b   :  { %191 = vmatprep.subr.bf16.mxu0 %v190_v7 }
  0x2d   :  { %v50_v9 = vld [vmem:[#allocation2 + $0x8] sm:$0xff]  ;;  %v49_v10 = vld [vmem:[#allocation2] sm:$0xff] }
  0x2e   :  { %193 = vmatpush3.bf16.msra.mxu0 %v190_v7 }
  0x31   :  { %184 = vmatmul.mubr.msk.f32.vlgmr.msra.gmra.mrb[0].mxu0 %vm57_vm1, %v52_v8 }
 0x104   :  { %v185_v11 = vpop.f32.mrb[0].mxu0 }
 0x105   :  { %v140_v12 = vadd.f32 %v185_v11, %v50_v9  ;;  %v130_v13 = vpop.f32.mrb[1].mxu0 }
 0x106   :  { %v139_v14 = vadd.f32 %v130_v13, %v49_v10 }
 0x107   :  { %143 = vst.msk [vmem:[#allocation2 + $0x8] sm:$0xff] %vm46_vm0, %v140_v12 }
 0x108   :  { %142 = vst.msk [vmem:[#allocation2] sm:$0xff] %vm46_vm0, %v139_v14 }
 0x10e   :  { %v148_v16 = vld [vmem:[#allocation2 + $0x8] sm:$0xff] }
 0x10f   :  { %v157_v17 = vadd.f32 %v168_v15, %v148_v16  ;;  %v147_v18 = vld [vmem:[#allocation2] sm:$0xff] }
 0x110   :  { %v156_v19 = vadd.f32 %v168_v15, %v147_v18 }
 0x111   :  { %159 = vst.msk [vmem:[%s314_s3 + $0x8] sm:$0xff] %vm46_vm0, %v157_v17 }
 0x112   :  { %158 = vst.msk [vmem:[%s314_s3] sm:$0xff] %vm46_vm0, %v156_v19 }
 0x113   :  { %164 = vsyncpa [#allocation4], 1 }
 0x114   :  { %165 = vsyncpa [#allocation6], 1 }

</bundles_post_ra>
